<compile_context>
chip_gen: v6e
topology: v6e:2x2x1
jax: 0.10.0
libtpu: 0.0.40
codegen_flags: <defaults>
</compile_context>

<pallas_src>
import jax
import jax.numpy as jnp
from jax.experimental import pallas as pl
from jax.experimental.pallas import tpu as pltpu

BN_EPS = 1e-5          # torch.nn.BatchNorm1d default eps
OUT_PAD = 128          # lane-dense padded output width (true output dim = 2)
OUT_DIM = 2
HID_PAD = 128          # layer-4 output / layer-5 input padded from 64 -> 128


# ------------------------------ Pallas kernel --------------------------------
def _mlp_kernel(x_ref,
                w1_ref, b1_ref, w2_ref, b2_ref, w3_ref, b3_ref,
                w4_ref, b4_ref, w5_ref, b5_ref,
                o_ref):
    """Entire DeepNet1 forward (eval mode) fused into one kernel.

    Linear + BatchNorm1d(eval) are pre-folded into (w, b) pairs, Dropout is
    identity.  Weights are bf16; activations are cast to bf16 only at the MXU
    input, accumulation / bias / ReLU stay in f32.
    """
    def layer(h, w_ref, b_ref, relu=True):
        acc = jnp.dot(h.astype(jnp.bfloat16), w_ref[...],
                      preferred_element_type=jnp.float32) + b_ref[...]
        return jnp.maximum(acc, 0.0) if relu else acc

    h = layer(x_ref[...], w1_ref, b1_ref)
    h = layer(h, w2_ref, b2_ref)
    h = layer(h, w3_ref, b3_ref)
    h = layer(h, w4_ref, b4_ref)
    o_ref[...] = layer(h, w5_ref, b5_ref, relu=False)


# ------------------------------ parameters -----------------------------------
def init_params(key, n_points):
    """Random weights + BatchNorm running stats / affine params (eval mode)."""
    dims = (n_points, 512, 256, 128, 64, OUT_DIM)
    keys = iter(jax.random.split(key, 64))

    def rnd(shape, scale=0.05):
        return scale * jax.random.normal(next(keys), shape, dtype=jnp.float32)

    p = {}
    for l in range(1, 6):
        fan_in, fan_out = dims[l - 1], dims[l]
        p[f"w{l}"] = rnd((fan_in, fan_out), scale=1.0 / float(fan_in) ** 0.5)
        p[f"b{l}"] = rnd((fan_out,))
        if l < 5:  # BatchNorm1d after fc1..fc4
            p[f"gamma{l}"] = 1.0 + rnd((fan_out,), 0.02)
            p[f"beta{l}"] = rnd((fan_out,), 0.02)
            p[f"mean{l}"] = rnd((fan_out,), 0.1)
            p[f"var{l}"] = 1.0 + 0.1 * jnp.abs(rnd((fan_out,)))
    return p


def _fold_linear_bn(w, b, gamma, beta, mean, var):
    """Fold eval-mode BatchNorm1d (incl. gamma/beta) into the preceding Linear."""
    s = gamma / jnp.sqrt(var + BN_EPS)
    return w * s[None, :], (b - mean) * s + beta


def _pick_tm(B):
    """Row-tile size: big tiles for big B, but keep >=2 grid steps (v7x 2 TCs)."""
    if B >= 256:
        for tm in (512, 256, 128):
            if B >= 2 * tm:
                return tm
        return 128
    # small batch: single tile, rounded up to a sublane multiple
    return min(128, max(8, -(-B // 8) * 8))


# ------------------------------ forward pass ----------------------------------
def deepnet1_forward(x, params):
    x = x.astype(jnp.float32)
    B, n_points = x.shape

    # --- fold Linear + BN(eval) per layer (done once, wrapper-side) ---
    ws, bs = [], []
    for l in range(1, 5):
        w_f, b_f = _fold_linear_bn(params[f"w{l}"], params[f"b{l}"],
                                   params[f"gamma{l}"], params[f"beta{l}"],
                                   params[f"mean{l}"], params[f"var{l}"])
        ws.append(w_f)
        bs.append(b_f[None, :])

    # pad layer-4 output (64) up to 128 lanes; pad final layer to (128, 128)
    w4 = jnp.zeros((128, HID_PAD), jnp.float32).at[:, :64].set(ws[3])
    b4 = jnp.zeros((1, HID_PAD), jnp.float32).at[:, :64].set(bs[3])
    ws[3], bs[3] = w4, b4
    w5 = jnp.zeros((HID_PAD, OUT_PAD), jnp.float32).at[:64, :OUT_DIM].set(params["w5"])
    b5 = jnp.zeros((1, OUT_PAD), jnp.float32).at[0, :OUT_DIM].set(params["b5"])
    ws.append(w5)
    bs.append(b5)

    # bf16 MXU operands; biases stay f32 (added after f32 accumulation)
    ws = [w.astype(jnp.bfloat16) for w in ws]

    # --- row-tiled grid; pad batch only if it doesn't divide the tile ---
    TM = _pick_tm(B)
    Bp = -(-B // TM) * TM
    xp = jnp.pad(x, ((0, Bp - B), (0, 0))) if Bp != B else x
    n_steps = Bp // TM

    inputs = [xp]
    for w, b in zip(ws, bs):
        inputs += [w, b]

    in_specs = [pl.BlockSpec((TM, n_points), lambda i: (i, 0))]
    in_specs += [pl.BlockSpec(a.shape, lambda i: (0, 0)) for a in inputs[1:]]
    out_spec = pl.BlockSpec((TM, OUT_PAD), lambda i: (i, 0))

    # --- scheduler hints: FLOP/bytes estimate + VMEM budget for the tiles ---
    flops = 2 * Bp * (n_points * 512 + 512 * 256 + 256 * 128
                      + 128 * HID_PAD + HID_PAD * OUT_PAD)
    bytes_accessed = (xp.size * 4
                      + sum(int(w.size) * 2 for w in ws)
                      + sum(int(b.size) * 4 for b in bs)
                      + Bp * OUT_PAD * 4)
    cost = pl.CostEstimate(flops=flops, transcendentals=0,
                           bytes_accessed=bytes_accessed)

    block_bytes = (2 * (TM * n_points * 4 + TM * OUT_PAD * 4)        # x / out tiles
                   + 2 * sum(int(w.size) * 2 for w in ws)            # weight blocks
                   + 2 * sum(int(b.size) * 4 for b in bs)            # bias blocks
                   + 6 * TM * 512 * 4)                               # live activations
    vmem_limit = int(min(max(block_bytes * 2, 32 << 20), 48 << 20))

    out = pl.pallas_call(
        _mlp_kernel,
        grid=(n_steps,),
        in_specs=in_specs,
        out_specs=out_spec,
        out_shape=jax.ShapeDtypeStruct((Bp, OUT_PAD), jnp.float32),
        compiler_params=pltpu.CompilerParams(
            dimension_semantics=("parallel",),
            vmem_limit_bytes=vmem_limit),
        cost_estimate=cost,
    )(*inputs)
    return out[:B, :OUT_DIM]


# --------------------------- pure-JAX reference --------------------------------
def _ref_forward(x, params):
    h = x.astype(jnp.float32)
    for l in range(1, 5):
        h = h @ params[f"w{l}"] + params[f"b{l}"]
        s = params[f"gamma{l}"] / jnp.sqrt(params[f"var{l}"] + BN_EPS)
        h = (h - params[f"mean{l}"]) * s + params[f"beta{l}"]
        h = jnp.maximum(h, 0.0)
    return h @ params["w5"] + params["b5"]


# ---------------------------------- main ---------------------------------------
if __name__ == "__main__":
    B, n_points = 2, 16
    key = jax.random.PRNGKey(0)
    k_x, k_par = jax.random.split(key)

    x = jax.random.normal(k_x, (B, n_points), jnp.float32)
    params = init_params(k_par, n_points)

    out = deepnet1_forward(x, params)
    out = jax.block_until_ready(out)

    assert out.shape == (B, OUT_DIM)
    assert bool(jnp.all(jnp.isfinite(out)))

    ref = jax.block_until_ready(_ref_forward(x, params))
    # tolerance accommodates bf16 matmul operands (f32 accumulation)
    assert bool(jnp.allclose(out, ref, rtol=1e-2, atol=1e-2)), "mismatch vs JAX reference"

    print("KERNEL_OK")
</pallas_src>

<mosaic_0001>
module attributes {stable_mosaic.version = 11 : i64} {
  func.func @_mlp_kernel(%arg0: i32, %arg1: memref<8x16xf32, #tpu.memory_space<vmem>>, %arg2: memref<16x512xbf16, #tpu.memory_space<vmem>>, %arg3: memref<1x512xf32, #tpu.memory_space<vmem>>, %arg4: memref<512x256xbf16, #tpu.memory_space<vmem>>, %arg5: memref<1x256xf32, #tpu.memory_space<vmem>>, %arg6: memref<256x128xbf16, #tpu.memory_space<vmem>>, %arg7: memref<1x128xf32, #tpu.memory_space<vmem>>, %arg8: memref<128x128xbf16, #tpu.memory_space<vmem>>, %arg9: memref<1x128xf32, #tpu.memory_space<vmem>>, %arg10: memref<128x128xbf16, #tpu.memory_space<vmem>>, %arg11: memref<1x128xf32, #tpu.memory_space<vmem>>, %arg12: memref<8x128xf32, #tpu.memory_space<vmem>>) attributes {dimension_semantics = [#tpu.dimension_semantics<parallel>], iteration_bounds = array<i64: 1>, scalar_prefetch = 0 : i64, scratch_operands = 0 : i64, tpu.core_type = #tpu.core_type<tc>, window_params = [{transform_indices = @transform_0, window_bounds = array<i64: 8, 16>}, {pipeline_mode = #tpu.pipeline_mode<synchronous>, transform_indices = @transform_1, window_bounds = array<i64: 16, 512>}, {pipeline_mode = #tpu.pipeline_mode<synchronous>, transform_indices = @transform_2, window_bounds = array<i64: 1, 512>}, {pipeline_mode = #tpu.pipeline_mode<synchronous>, transform_indices = @transform_3, window_bounds = array<i64: 512, 256>}, {pipeline_mode = #tpu.pipeline_mode<synchronous>, transform_indices = @transform_4, window_bounds = array<i64: 1, 256>}, {pipeline_mode = #tpu.pipeline_mode<synchronous>, transform_indices = @transform_5, window_bounds = array<i64: 256, 128>}, {pipeline_mode = #tpu.pipeline_mode<synchronous>, transform_indices = @transform_6, window_bounds = array<i64: 1, 128>}, {pipeline_mode = #tpu.pipeline_mode<synchronous>, transform_indices = @transform_7, window_bounds = array<i64: 128, 128>}, {pipeline_mode = #tpu.pipeline_mode<synchronous>, transform_indices = @transform_8, window_bounds = array<i64: 1, 128>}, {pipeline_mode = #tpu.pipeline_mode<synchronous>, transform_indices = @transform_9, window_bounds = array<i64: 128, 128>}, {pipeline_mode = #tpu.pipeline_mode<synchronous>, transform_indices = @transform_10, window_bounds = array<i64: 1, 128>}, {transform_indices = @transform_11, window_bounds = array<i64: 8, 128>}]} {
    %c0 = arith.constant 0 : index
    %c0_0 = arith.constant 0 : index
    %0 = vector.load %arg1[%c0, %c0_0] : memref<8x16xf32, #tpu.memory_space<vmem>>, vector<8x16xf32>
    %1 = arith.truncf %0 : vector<8x16xf32> to vector<8x16xbf16>
    %c0_1 = arith.constant 0 : index
    %c0_2 = arith.constant 0 : index
    %2 = vector.load %arg2[%c0_1, %c0_2] : memref<16x512xbf16, #tpu.memory_space<vmem>>, vector<16x512xbf16>
    %cst = arith.constant dense<0.000000e+00> : vector<8x512xf32>
    %3 = tpu.matmul %1, %2, %cst {dimension_numbers = #tpu.dot_dimension_numbers<[1], [0], [0], [1], [0, 0, 1, 1], [], []>} : vector<8x16xbf16>, vector<16x512xbf16>, vector<8x512xf32> -> vector<8x512xf32>
    %c0_3 = arith.constant 0 : index
    %c0_4 = arith.constant 0 : index
    %4 = vector.load %arg3[%c0_3, %c0_4] : memref<1x512xf32, #tpu.memory_space<vmem>>, vector<1x512xf32>
    %5 = vector.broadcast %4 : vector<1x512xf32> to vector<8x512xf32>
    %6 = arith.addf %3, %5 : vector<8x512xf32>
    %cst_5 = arith.constant 0.000000e+00 : f32
    %7 = vector.broadcast %cst_5 : f32 to vector<8x512xf32>
    %8 = arith.maximumf %6, %7 : vector<8x512xf32>
    %9 = arith.truncf %8 : vector<8x512xf32> to vector<8x512xbf16>
    %c0_6 = arith.constant 0 : index
    %c0_7 = arith.constant 0 : index
    %10 = vector.load %arg4[%c0_6, %c0_7] : memref<512x256xbf16, #tpu.memory_space<vmem>>, vector<512x256xbf16>
    %cst_8 = arith.constant dense<0.000000e+00> : vector<8x256xf32>
    %11 = tpu.matmul %9, %10, %cst_8 {dimension_numbers = #tpu.dot_dimension_numbers<[1], [0], [0], [1], [0, 0, 1, 1], [], []>} : vector<8x512xbf16>, vector<512x256xbf16>, vector<8x256xf32> -> vector<8x256xf32>
    %c0_9 = arith.constant 0 : index
    %c0_10 = arith.constant 0 : index
    %12 = vector.load %arg5[%c0_9, %c0_10] : memref<1x256xf32, #tpu.memory_space<vmem>>, vector<1x256xf32>
    %13 = vector.broadcast %12 : vector<1x256xf32> to vector<8x256xf32>
    %14 = arith.addf %11, %13 : vector<8x256xf32>
    %cst_11 = arith.constant 0.000000e+00 : f32
    %15 = vector.broadcast %cst_11 : f32 to vector<8x256xf32>
    %16 = arith.maximumf %14, %15 : vector<8x256xf32>
    %17 = arith.truncf %16 : vector<8x256xf32> to vector<8x256xbf16>
    %c0_12 = arith.constant 0 : index
    %c0_13 = arith.constant 0 : index
    %18 = vector.load %arg6[%c0_12, %c0_13] : memref<256x128xbf16, #tpu.memory_space<vmem>>, vector<256x128xbf16>
    %cst_14 = arith.constant dense<0.000000e+00> : vector<8x128xf32>
    %19 = tpu.matmul %17, %18, %cst_14 {dimension_numbers = #tpu.dot_dimension_numbers<[1], [0], [0], [1], [0, 0, 1, 1], [], []>} : vector<8x256xbf16>, vector<256x128xbf16>, vector<8x128xf32> -> vector<8x128xf32>
    %c0_15 = arith.constant 0 : index
    %c0_16 = arith.constant 0 : index
    %20 = vector.load %arg7[%c0_15, %c0_16] : memref<1x128xf32, #tpu.memory_space<vmem>>, vector<1x128xf32>
    %21 = vector.broadcast %20 : vector<1x128xf32> to vector<8x128xf32>
    %22 = arith.addf %19, %21 : vector<8x128xf32>
    %cst_17 = arith.constant 0.000000e+00 : f32
    %23 = vector.broadcast %cst_17 : f32 to vector<8x128xf32>
    %24 = arith.maximumf %22, %23 : vector<8x128xf32>
    %25 = arith.truncf %24 : vector<8x128xf32> to vector<8x128xbf16>
    %c0_18 = arith.constant 0 : index
    %c0_19 = arith.constant 0 : index
    %26 = vector.load %arg8[%c0_18, %c0_19] : memref<128x128xbf16, #tpu.memory_space<vmem>>, vector<128x128xbf16>
    %cst_20 = arith.constant dense<0.000000e+00> : vector<8x128xf32>
    %27 = tpu.matmul %25, %26, %cst_20 {dimension_numbers = #tpu.dot_dimension_numbers<[1], [0], [0], [1], [0, 0, 1, 1], [], []>} : vector<8x128xbf16>, vector<128x128xbf16>, vector<8x128xf32> -> vector<8x128xf32>
    %c0_21 = arith.constant 0 : index
    %c0_22 = arith.constant 0 : index
    %28 = vector.load %arg9[%c0_21, %c0_22] : memref<1x128xf32, #tpu.memory_space<vmem>>, vector<1x128xf32>
    %29 = vector.broadcast %28 : vector<1x128xf32> to vector<8x128xf32>
    %30 = arith.addf %27, %29 : vector<8x128xf32>
    %cst_23 = arith.constant 0.000000e+00 : f32
    %31 = vector.broadcast %cst_23 : f32 to vector<8x128xf32>
    %32 = arith.maximumf %30, %31 : vector<8x128xf32>
    %33 = arith.truncf %32 : vector<8x128xf32> to vector<8x128xbf16>
    %c0_24 = arith.constant 0 : index
    %c0_25 = arith.constant 0 : index
    %34 = vector.load %arg10[%c0_24, %c0_25] : memref<128x128xbf16, #tpu.memory_space<vmem>>, vector<128x128xbf16>
    %cst_26 = arith.constant dense<0.000000e+00> : vector<8x128xf32>
    %35 = tpu.matmul %33, %34, %cst_26 {dimension_numbers = #tpu.dot_dimension_numbers<[1], [0], [0], [1], [0, 0, 1, 1], [], []>} : vector<8x128xbf16>, vector<128x128xbf16>, vector<8x128xf32> -> vector<8x128xf32>
    %c0_27 = arith.constant 0 : index
    %c0_28 = arith.constant 0 : index
    %36 = vector.load %arg11[%c0_27, %c0_28] : memref<1x128xf32, #tpu.memory_space<vmem>>, vector<1x128xf32>
    %37 = vector.broadcast %36 : vector<1x128xf32> to vector<8x128xf32>
    %38 = arith.addf %35, %37 : vector<8x128xf32>
    %c0_29 = arith.constant 0 : index
    %c0_30 = arith.constant 0 : index
    %39 = vector.load %arg12[%c0_29, %c0_30] : memref<8x128xf32, #tpu.memory_space<vmem>>, vector<8x128xf32>
    tpu.vector_store %arg12[%c0_29, %c0_30], %38 {strides = array<i32>} : memref<8x128xf32, #tpu.memory_space<vmem>>, vector<8x128xf32>,
    return
  }
  func.func @transform_0(%arg0: i32) -> (i32, i32) {
    %c0_i32 = arith.constant 0 : i32
    %c0_i32_0 = arith.constant 0 : i32
    return %arg0, %c0_i32 : i32, i32
  }
  func.func @transform_1(%arg0: i32) -> (i32, i32) {
    %c0_i32 = arith.constant 0 : i32
    %c0_i32_0 = arith.constant 0 : i32
    %c0_i32_1 = arith.constant 0 : i32
    return %c0_i32, %c0_i32_0 : i32, i32
  }
  func.func @transform_2(%arg0: i32) -> (i32, i32) {
    %c0_i32 = arith.constant 0 : i32
    %c0_i32_0 = arith.constant 0 : i32
    %c0_i32_1 = arith.constant 0 : i32
    return %c0_i32, %c0_i32_0 : i32, i32
  }
  func.func @transform_3(%arg0: i32) -> (i32, i32) {
    %c0_i32 = arith.constant 0 : i32
    %c0_i32_0 = arith.constant 0 : i32
    %c0_i32_1 = arith.constant 0 : i32
    return %c0_i32, %c0_i32_0 : i32, i32
  }
  func.func @transform_4(%arg0: i32) -> (i32, i32) {
    %c0_i32 = arith.constant 0 : i32
    %c0_i32_0 = arith.constant 0 : i32
    %c0_i32_1 = arith.constant 0 : i32
    return %c0_i32, %c0_i32_0 : i32, i32
  }
  func.func @transform_5(%arg0: i32) -> (i32, i32) {
    %c0_i32 = arith.constant 0 : i32
    %c0_i32_0 = arith.constant 0 : i32
    %c0_i32_1 = arith.constant 0 : i32
    return %c0_i32, %c0_i32_0 : i32, i32
  }
  func.func @transform_6(%arg0: i32) -> (i32, i32) {
    %c0_i32 = arith.constant 0 : i32
    %c0_i32_0 = arith.constant 0 : i32
    %c0_i32_1 = arith.constant 0 : i32
    return %c0_i32, %c0_i32_0 : i32, i32
  }
  func.func @transform_7(%arg0: i32) -> (i32, i32) {
    %c0_i32 = arith.constant 0 : i32
    %c0_i32_0 = arith.constant 0 : i32
    %c0_i32_1 = arith.constant 0 : i32
    return %c0_i32, %c0_i32_0 : i32, i32
  }
  func.func @transform_8(%arg0: i32) -> (i32, i32) {
    %c0_i32 = arith.constant 0 : i32
    %c0_i32_0 = arith.constant 0 : i32
    %c0_i32_1 = arith.constant 0 : i32
    return %c0_i32, %c0_i32_0 : i32, i32
  }
  func.func @transform_9(%arg0: i32) -> (i32, i32) {
    %c0_i32 = arith.constant 0 : i32
    %c0_i32_0 = arith.constant 0 : i32
    %c0_i32_1 = arith.constant 0 : i32
    return %c0_i32, %c0_i32_0 : i32, i32
  }
  func.func @transform_10(%arg0: i32) -> (i32, i32) {
    %c0_i32 = arith.constant 0 : i32
    %c0_i32_0 = arith.constant 0 : i32
    %c0_i32_1 = arith.constant 0 : i32
    return %c0_i32, %c0_i32_0 : i32, i32
  }
  func.func @transform_11(%arg0: i32) -> (i32, i32) {
    %c0_i32 = arith.constant 0 : i32
    %c0_i32_0 = arith.constant 0 : i32
    return %arg0, %c0_i32 : i32, i32
  }
}

</mosaic_0001>

<bundles_post_ra>
// kernel: tpu_custom_call.1
= control target key start
LH: loop header
LB: loop body
LE: loop exit
PB: predicated region body
PF: predicated region fallthrough
CT: control target
= control target key end

     0   :  { %16 = vsyncpa [#allocation3], 0  ;;  %s1837_s0 = inlined_call_operand.hbm [shape: f32[8,16], index: 0, kind: input, shape index: {}]   ;;  %s1838_s1 = inlined_call_operand.hbm [shape: bf16[16,512], index: 1, kind: input, shape index: {}]   ;;  %s1839_s2 = inlined_call_operand.hbm [shape: f32[1,512], index: 2, kind: input, shape index: {}]   ;;  %s1840_s3 = inlined_call_operand.hbm [shape: bf16[512,256], index: 3, kind: input, shape index: {}]   ;;  %s1841_s4 = inlined_call_operand.vmem [shape: f32[1,256], index: 4, kind: input, shape index: {}]   ;;  %s1842_s5 = inlined_call_operand.hbm [shape: bf16[256,128], index: 5, kind: input, shape index: {}]   ;;  %s1843_s6 = inlined_call_operand.vmem [shape: f32[1,128], index: 6, kind: input, shape index: {}]   ;;  %s1844_s7 = inlined_call_operand.hbm [shape: bf16[128,128], index: 7, kind: input, shape index: {}]   ;;  %s1845_s8 = inlined_call_operand.vmem [shape: f32[1,128], index: 8, kind: input, shape index: {}]   ;;  %s1846_s9 = inlined_call_operand.hbm [shape: bf16[128,128], index: 9, kind: input, shape index: {}]   ;;  %s1847_s10 = inlined_call_operand.vmem [shape: f32[1,128], index: 10, kind: input, shape index: {}]   ;;  %s1848_s11 = inlined_call_operand.hbm [shape: f32[8,128], index: 11, kind: output, shape index: {}]  }
   0x1   :  { %17 = vsyncpa [#allocation6], 0 }
   0x2   :  { %18 = vsyncpa [#allocation9], 0 }
   0x3   :  { %19 = vsyncpa [#allocation12], 0 }
   0x4   :  { %20 = vsyncpa [#allocation4], 0  ;;  %s1681_s17 = smov [#allocation5]  }
   0x5   :  { %s36_s18 = sshll.u32 %s1681_s17, 4  ;;  %s37_s18 = int_to_ptr.vmem [resolvable:$true] %s36_s18 }
   0x6   :  { %s1519_s19 = scalar_lea.vmem %s37_s18, 512  ;;  %p1524_p1 = scmp.lt.s32.totalorder %s37_s18, %s37_s18 }
   0x7   :  { %p1520_p0 = scmp.ne.s32.totalorder %s37_s18, %s1519_s19  ;;  %p1525_p2 = scmp.lt.s32.totalorder %s1519_s19, %s1519_s19 }
   0x9   :  { %p1526_p3 = por %p1525_p2, %p1524_p1 }
   0xb   :  { %p1527_p4 = pnand %p1526_p3, %p1520_p0 }
   0xd   :  { %1530 = shalt.err (!%p1527_p4)
}
   0xe   :  { %s1682_s20 = smov 256   ;;  %s1683_s21 = smov 16  }
   0xf   :  { %42 = dma.hbm_to_vmem [thread:$0]  %s1838_s1, 512, %s37_s18, [#allocation6], %s1682_s20, %s1682_s20, %s1683_s21  }
  0x10   :  { %s1684_s24 = smov [#allocation8]  }
  0x11   :  { %s58_s25 = sshll.u32 %s1684_s24, 4  ;;  %s59_s25 = int_to_ptr.vmem [resolvable:$true] %s58_s25 }
  0x12   :  { %s1539_s26 = scalar_lea.vmem %s59_s25, 8192  ;;  %p1544_p6 = scmp.lt.s32.totalorder %s59_s25, %s59_s25 }
  0x13   :  { %p1540_p5 = scmp.ne.s32.totalorder %s59_s25, %s1539_s26  ;;  %p1545_p7 = scmp.lt.s32.totalorder %s1539_s26, %s1539_s26 }
  0x15   :  { %p1546_p8 = por %p1545_p7, %p1544_p6 }
  0x17   :  { %p1547_p9 = pnand %p1546_p8, %p1540_p5 }
  0x19   :  { %1550 = shalt.err (!%p1547_p9)
}
  0x1a   :  { %s1685_s27 = smov 128   ;;  %s1686_s28 = smov 8  }
  0x1b   :  { %64 = dma.hbm_to_vmem [thread:$0]  %s1840_s3, 8192, %s59_s25, [#allocation9], %s1685_s27, %s1685_s27, %s1686_s28  }
  0x1c   :  { %s1687_s12 = smov [#allocation11]   ;;  %s1688_s14 = smov [#allocation2]  }
  0x1d   :  { %s86_s13 = sshll.u32 %s1687_s12, 4  ;;  %s27_s1 = sshll.u32 %s1688_s14, 4  ;;  %s87_s13 = int_to_ptr.vmem [resolvable:$true] %s86_s13  ;;  %s28_s1 = int_to_ptr.vmem [resolvable:$true] %s27_s1 }
  0x1e   :  { %s1559_s15 = scalar_lea.vmem %s87_s13, 1024  ;;  %p1564_p11 = scmp.lt.s32.totalorder %s87_s13, %s87_s13 }
  0x1f   :  { %p1560_p10 = scmp.ne.s32.totalorder %s87_s13, %s1559_s15  ;;  %p1565_p12 = scmp.lt.s32.totalorder %s1559_s15, %s1559_s15 }
  0x21   :  { %p1566_p13 = por %p1565_p12, %p1564_p11 }
  0x23   :  { %p1567_p0 = pnand %p1566_p13, %p1560_p10 }
  0x25   :  { %1570 = shalt.err (!%p1567_p0)
}
  0x26   :  { %s1689_s16 = smov 64   ;;  %s1690_s17 = smov 4  }
  0x27   :  { %92 = dma.hbm_to_vmem [thread:$0]  %s1844_s7, 1024, %s87_s13, [#allocation12], %s1689_s16, %s1689_s16, %s1690_s17  }
  0x28   :  { %s1579_s19 = scalar_lea.vmem %s28_s1, 128  ;;  %p1584_p2 = scmp.lt.s32.totalorder %s28_s1, %s28_s1 }
  0x29   :  { %p1580_p1 = scmp.ne.s32.totalorder %s28_s1, %s1579_s19  ;;  %p1585_p3 = scmp.lt.s32.totalorder %s1579_s19, %s1579_s19 }
  0x2b   :  { %p1586_p4 = por %p1585_p3, %p1584_p2 }
  0x2d   :  { %p1587_p5 = pnand %p1586_p4, %p1580_p1 }
  0x2f   :  { %1590 = shalt.err (!%p1587_p5)
}
  0x30   :  { %30 = dma.hbm_to_vmem [thread:$0]  %s1837_s0, 128, %s28_s1, [#allocation3]  }
  0x31   :  { %s1691_s22 = smov [#allocation7]   ;;  %s1692_s24 = smov [#allocation10]  }
  0x32   :  { %s49_s23 = sshll.u32 %s1691_s22, 4  ;;  %s72_s25 = sshll.u32 %s1692_s24, 4  ;;  %s50_s23 = int_to_ptr.vmem [resolvable:$true] %s49_s23  ;;  %s73_s25 = int_to_ptr.vmem [resolvable:$true] %s72_s25 }
  0x33   :  { %s1599_s26 = scalar_lea.vmem %s50_s23, 64  ;;  %p1604_p7 = scmp.lt.s32.totalorder %s50_s23, %s50_s23 }
  0x34   :  { %p1600_p6 = scmp.ne.s32.totalorder %s50_s23, %s1599_s26  ;;  %p1605_p8 = scmp.lt.s32.totalorder %s1599_s26, %s1599_s26 }
  0x36   :  { %p1606_p9 = por %p1605_p8, %p1604_p7 }
  0x38   :  { %p1607_p10 = pnand %p1606_p9, %p1600_p6 }
  0x3a   :  { %1610 = shalt.err (!%p1607_p10)
}
  0x3b   :  { %52 = dma.hbm_to_vmem [thread:$0]  %s1839_s2, 64, %s50_s23, [#allocation6]  }
  0x3c   :  { %s1619_s28 = scalar_lea.vmem %s73_s25, 2048  ;;  %p1624_p12 = scmp.lt.s32.totalorder %s73_s25, %s73_s25 }
  0x3d   :  { %p1620_p11 = scmp.ne.s32.totalorder %s73_s25, %s1619_s28  ;;  %p1625_p13 = scmp.lt.s32.totalorder %s1619_s28, %s1619_s28 }
  0x3f   :  { %p1626_p0 = por %p1625_p13, %p1624_p12 }
  0x41   :  { %p1627_p1 = pnand %p1626_p0, %p1620_p11 }
  0x43   :  { %1630 = shalt.err (!%p1627_p1)
}
  0x44   :  { %78 = dma.hbm_to_vmem [thread:$0]  %s1842_s5, 2048, %s73_s25, [#allocation9], %s1689_s16, %s1689_s16, %s1690_s17  }
  0x45   :  { %s1693_s30 = smov [#allocation13]  }
  0x46   :  { %s100_s12 = sshll.u32 %s1693_s30, 4  ;;  %s101_s12 = int_to_ptr.vmem [resolvable:$true] %s100_s12 }
  0x47   :  { %s1639_s13 = scalar_lea.vmem %s101_s12, 1024  ;;  %p1644_p3 = scmp.lt.s32.totalorder %s101_s12, %s101_s12 }
  0x48   :  { %p1640_p2 = scmp.ne.s32.totalorder %s101_s12, %s1639_s13  ;;  %p1645_p4 = scmp.lt.s32.totalorder %s1639_s13, %s1639_s13 }
  0x4a   :  { %p1646_p5 = por %p1645_p4, %p1644_p3 }
  0x4c   :  { %p1647_p6 = pnand %p1646_p5, %p1640_p2 }
  0x4e   :  { %1650 = shalt.err (!%p1647_p6)
}
  0x4f   :  { %106 = dma.hbm_to_vmem [thread:$0]  %s1846_s9, 1024, %s101_s12, [#allocation12], %s1689_s16, %s1689_s16, %s1690_s17  }
  0x50   :  { %1671 = dma.done.wait [#allocation3], 128  }
  0x51   :  { %1672 = vsyncadd [#allocation3], 4294967168 }
  0x52   :  { %1673 = dma.done.wait [#allocation6], 576  }
  0x53   :  { %1674 = vsyncadd [#allocation6], 4294966720 }
  0x54   :  { %1675 = dma.done.wait [#allocation9], 10240  }
  0x55   :  { %1676 = vsyncadd [#allocation9], 4294957056 }
  0x56   :  { %1677 = dma.done.wait [#allocation12], 2048  }
  0x57   :  { %1678 = vsyncadd [#allocation12], 4294965248  ;;  %v1694_v0 = vmov 0   ;;  %v1377_v1 = vld [vmem:[#allocation5 + $0x4] ss:$16 sps:$4 sm:$0xff]   ;;  %v131_v3 = vld [vmem:[#allocation2] sm:$0xff] }
  0x58   :  { %215 = vmatprep.mubr.bf16.mxu1 %v1694_v0  ;;  %v1379_v2 = vld [vmem:[#allocation5] ss:$16 sps:$4 sm:$0xff]   ;;  %197 = vmatprep.subr.bf16.mxu1 %v1377_v1  ;;  %v132_v4 = vpack.c.bf16 %v131_v3, %v131_v3  ;;  %v1380_v5 = vld [vmem:[#allocation5 + $0x8] ss:$16 sps:$4 sm:$0xff]   ;;  %v1382_v6 = vld [vmem:[#allocation5 + $0xc] ss:$16 sps:$4 sm:$0xff]  }
  0x59   :  { %198 = vmatpush1.bf16.msra.mxu1 %v1379_v2  ;;  %vm179_vm0 = vcmask 130048   ;;  %v1383_v7 = vld [vmem:[#allocation8 + $0x74] ss:$8 sps:$4 sm:$0xff]   ;;  %v1385_v8 = vld [vmem:[#allocation8 + $0x70] ss:$8 sps:$4 sm:$0xff]   ;;  %vm1696_vm1 = vmmov 0  }
  0x5a   :  { %238 = vmatprep.subr.bf16.mxu1 %v1382_v6  ;;  %669 = vmatprep.subr.bf16.mxu0 %v1383_v7  ;;  %v1386_v9 = vld [vmem:[#allocation8 + $0x64] ss:$8 sps:$4 sm:$0xff]   ;;  %v1388_v10 = vld [vmem:[#allocation8 + $0x60] ss:$8 sps:$4 sm:$0xff]   ;;  %v1389_v11 = vld [vmem:[#allocation8 + $0x54] ss:$8 sps:$4 sm:$0xff]  }
  0x5b   :  { %670 = vmatpush1.bf16.msra.mxu0 %v1385_v8  ;;  %v1393_v12 = vld [vmem:[#allocation8 + $0x174] ss:$8 sps:$4 sm:$0xff]   ;;  %v1391_v13 = vld [vmem:[#allocation8 + $0x170] ss:$8 sps:$4 sm:$0xff]   ;;  %v1395_v15 = vld [vmem:[#allocation8 + $0x44] ss:$8 sps:$4 sm:$0xff]   ;;  %v139_v8 = vlaneseq }
  0x5c   :  { %1179 = vmatmul.mubr.msk.bf16.vlgmr.msra.gmra.mxu1 %vm179_vm0, %v132_v4  ;;  %671 = vmatprep.subr.bf16.mxu0 %v1386_v9  ;;  %v1394_v14 = vld [vmem:[#allocation8 + $0x50] ss:$8 sps:$4 sm:$0xff]   ;;  %v1399_v16 = vld [vmem:[#allocation8 + $0x164] ss:$8 sps:$4 sm:$0xff]   ;;  %v1400_v17 = vld [vmem:[#allocation8 + $0x40] ss:$8 sps:$4 sm:$0xff]  }
  0x5d   :  { %239 = vmatpush1.bf16.msra.mxu1 %v1380_v5  ;;  %256 = vmatprep.mubr.bf16.mxu1 %v1694_v0  ;;  %v1397_v18 = vld [vmem:[#allocation8 + $0x160] ss:$8 sps:$4 sm:$0xff]   ;;  %v1401_v19 = vld [vmem:[#allocation8 + $0x34] ss:$8 sps:$4 sm:$0xff]   ;;  %v1403_v21 = vld [vmem:[#allocation8 + $0x150] ss:$8 sps:$4 sm:$0xff]  }
  0x5e   :  { %710 = vmatprep.subr.bf16.mxu1 %v1393_v12  ;;  %v1405_v20 = vld [vmem:[#allocation8 + $0x154] ss:$8 sps:$4 sm:$0xff]   ;;  %v1406_v22 = vld [vmem:[#allocation8 + $0x30] ss:$8 sps:$4 sm:$0xff]   ;;  %v1407_v23 = vld [vmem:[#allocation8 + $0x24] ss:$8 sps:$4 sm:$0xff]  }
  0x5f   :  { %672 = vmatpush1.bf16.msra.mxu0 %v1388_v10  ;;  %v1411_v24 = vld [vmem:[#allocation8 + $0x144] ss:$8 sps:$4 sm:$0xff]   ;;  %v1412_v25 = vld [vmem:[#allocation8 + $0x20] ss:$8 sps:$4 sm:$0xff]   ;;  %v1413_v27 = vld [vmem:[#allocation8 + $0x14] ss:$8 sps:$4 sm:$0xff]  }
  0x60   :  { %673 = vmatprep.subr.bf16.mxu0 %v1389_v11  ;;  %v1409_v26 = vld [vmem:[#allocation8 + $0x140] ss:$8 sps:$4 sm:$0xff]   ;;  %v1417_v28 = vld [vmem:[#allocation8 + $0x134] ss:$8 sps:$4 sm:$0xff]   ;;  %v1415_v29 = vld [vmem:[#allocation8 + $0x130] ss:$8 sps:$4 sm:$0xff]  }
  0x61   :  { %v1418_v30 = vld [vmem:[#allocation8 + $0x10] ss:$8 sps:$4 sm:$0xff]   ;;  %v1419_v31 = vld [vmem:[#allocation8 + $0x4] ss:$8 sps:$4 sm:$0xff]   ;;  %v1424_v33 = vld [vmem:[#allocation8] ss:$8 sps:$4 sm:$0xff]  }
  0x62   :  { %v1423_v32 = vld [vmem:[#allocation8 + $0x124] ss:$8 sps:$4 sm:$0xff]   ;;  %v1421_v34 = vld [vmem:[#allocation8 + $0x120] ss:$8 sps:$4 sm:$0xff]   ;;  %v1425_v35 = vld [vmem:[#allocation8 + $0xf4] ss:$8 sps:$4 sm:$0xff]  }
  0x63   :  { %674 = vmatpush1.bf16.msra.mxu0 %v1394_v14  ;;  %v1429_v36 = vld [vmem:[#allocation8 + $0x114] ss:$8 sps:$4 sm:$0xff]   ;;  %v1427_v37 = vld [vmem:[#allocation8 + $0x110] ss:$8 sps:$4 sm:$0xff]   ;;  %v1431_v39 = vld [vmem:[#allocation8 + $0xe4] ss:$8 sps:$4 sm:$0xff]  }
  0x64   :  { %1180 = vmatmul.mubr.msk.bf16.vlgmr.msra.gmra.mxu1 %vm179_vm0, %v132_v4  ;;  %675 = vmatprep.subr.bf16.mxu0 %v1395_v15  ;;  %v1430_v38 = vld [vmem:[#allocation8 + $0xf0] ss:$8 sps:$4 sm:$0xff]   ;;  %v1435_v40 = vld [vmem:[#allocation8 + $0x104] ss:$8 sps:$4 sm:$0xff]   ;;  %v1433_v41 = vld [vmem:[#allocation8 + $0x100] ss:$8 sps:$4 sm:$0xff]  }
  0x65   :  { %711 = vmatpush1.bf16.msra.mxu1 %v1391_v13  ;;  %v1436_v42 = vld [vmem:[#allocation8 + $0xe0] ss:$8 sps:$4 sm:$0xff]   ;;  %v1437_v43 = vld [vmem:[#allocation8 + $0xd4] ss:$8 sps:$4 sm:$0xff]   ;;  %v1442_v45 = vld [vmem:[#allocation8 + $0xd0] ss:$8 sps:$4 sm:$0xff]  }
  0x66   :  { %712 = vmatprep.subr.bf16.mxu1 %v1399_v16  ;;  %v1441_v44 = vld [vmem:[#allocation8 + $0x1f4] ss:$8 sps:$4 sm:$0xff]   ;;  %v1439_v46 = vld [vmem:[#allocation8 + $0x1f0] ss:$8 sps:$4 sm:$0xff]   ;;  %v1443_v47 = vld [vmem:[#allocation8 + $0xc4] ss:$8 sps:$4 sm:$0xff]  }
  0x67   :  { %676 = vmatpush1.bf16.msra.mxu0 %v1400_v17  ;;  %v1447_v48 = vld [vmem:[#allocation8 + $0x1e4] ss:$8 sps:$4 sm:$0xff]   ;;  %v1448_v49 = vld [vmem:[#allocation8 + $0xc0] ss:$8 sps:$4 sm:$0xff]   ;;  %v1449_v51 = vld [vmem:[#allocation8 + $0xb4] ss:$8 sps:$4 sm:$0xff]  }
  0x68   :  { %677 = vmatprep.subr.bf16.mxu0 %v1401_v19  ;;  %v1445_v50 = vld [vmem:[#allocation8 + $0x1e0] ss:$8 sps:$4 sm:$0xff]   ;;  %v1453_v52 = vld [vmem:[#allocation8 + $0x1d4] ss:$8 sps:$4 sm:$0xff]   ;;  %v1454_v53 = vld [vmem:[#allocation8 + $0xb0] ss:$8 sps:$4 sm:$0xff]  }
  0x69   :  { %713 = vmatpush1.bf16.msra.mxu1 %v1397_v18  ;;  %v1451_v54 = vld [vmem:[#allocation8 + $0x1d0] ss:$8 sps:$4 sm:$0xff]   ;;  %v1455_v55 = vld [vmem:[#allocation8 + $0xa4] ss:$8 sps:$4 sm:$0xff]   ;;  %v1460_v57 = vld [vmem:[#allocation8 + $0xa0] ss:$8 sps:$4 sm:$0xff]  }
  0x6a   :  { %714 = vmatprep.subr.bf16.mxu1 %v1405_v20  ;;  %v1459_v56 = vld [vmem:[#allocation8 + $0x1c4] ss:$8 sps:$4 sm:$0xff]   ;;  %v1457_v58 = vld [vmem:[#allocation8 + $0x1c0] ss:$8 sps:$4 sm:$0xff]   ;;  %v1461_v59 = vld [vmem:[#allocation8 + $0x94] ss:$8 sps:$4 sm:$0xff]  }
  0x6b   :  { %678 = vmatpush1.bf16.msra.mxu0 %v1406_v22  ;;  %v1465_v60 = vld [vmem:[#allocation8 + $0x1b4] ss:$8 sps:$4 sm:$0xff]   ;;  %v1463_v61 = vld [vmem:[#allocation8 + $0x1b0] ss:$8 sps:$4 sm:$0xff]   ;;  %v1467_v63 = vld [vmem:[#allocation8 + $0x84] ss:$8 sps:$4 sm:$0xff]  }
  0x6c   :  { %679 = vmatprep.subr.bf16.mxu0 %v1407_v23  ;;  %v1466_v62 = vld [vmem:[#allocation8 + $0x90] ss:$8 sps:$4 sm:$0xff]   ;;  %v1471_v0 = vld [vmem:[#allocation8 + $0x1a4] ss:$8 sps:$4 sm:$0xff]   ;;  %v1469_v1 = vld [vmem:[#allocation8 + $0x1a0] ss:$8 sps:$4 sm:$0xff]  }
  0x6d   :  { %715 = vmatpush1.bf16.msra.mxu1 %v1403_v21  ;;  %v1472_v2 = vld [vmem:[#allocation8 + $0x80] ss:$8 sps:$4 sm:$0xff]   ;;  %v1475_v3 = vld [vmem:[#allocation8 + $0x194] ss:$8 sps:$4 sm:$0xff]   ;;  %v1473_v4 = vld [vmem:[#allocation8 + $0x190] ss:$8 sps:$4 sm:$0xff]  }
  0x6e   :  { %716 = vmatprep.subr.bf16.mxu1 %v1411_v24  ;;  %v1478_v5 = vld [vmem:[#allocation8 + $0x184] ss:$8 sps:$4 sm:$0xff]   ;;  %v1476_v6 = vld [vmem:[#allocation8 + $0x180] ss:$8 sps:$4 sm:$0xff]   ;;  %v1479_v7 = vld [vmem:[#allocation10 + $0x78] sm:$0xff]   ;;  %v1790_v9 = vshrl.u32 %v139_v8, 7 }
  0x6f   :  { %680 = vmatpush1.bf16.msra.mxu0 %v1412_v25  ;;  %v137_v11 = vld [vmem:[#allocation7] sm:$0xf]  ;;  %s1697_s18 = smov [#allocation14]  }
  0x70   :  { %681 = vmatprep.subr.bf16.mxu0 %v1413_v27  ;;  %v141_v10 = vsub.s32 0, %v1790_v9  ;;  %v145_v12 = vsub.s32 1, %v1790_v9  ;;  %v149_v17 = vsub.s32 2, %v1790_v9  ;;  %v153_v20 = vsub.s32 3, %v1790_v9  ;;  %v1501_v9 = vld [vmem:[#allocation11 + $0x8] sm:$0xff]   ;;  %s1163_s3 = sshll.u32 %s1697_s18, 4  ;;  %s1164_s3 = int_to_ptr.vmem [resolvable:$true] %s1163_s3 }
  0x71   :  { %717 = vmatpush1.bf16.msra.mxu1 %v1409_v26  ;;  %p1656_p8 = scmp.lt.s32.totalorder %s1164_s3, %s1164_s3 }
  0x72   :  { %718 = vmatprep.subr.bf16.mxu1 %v1417_v28  ;;  %v142_v13 = vrot.slane %v137_v11, %v141_v10  ;;  %v146_v14 = vrot.slane %v137_v11, %v145_v12  ;;  %v150_v23 = vrot.slane %v137_v11, %v149_v17  ;;  %v154_v27 = vrot.slane %v137_v11, %v153_v20  ;;  %v1480_v28 = vld [vmem:[#allocation10 + $0x38] sm:$0xff]   ;;  %v1505_v20 = vld [vmem:[#allocation13 + $0x28] sm:$0xff]  }
  0x73   :  { %682 = vmatpush1.bf16.msra.mxu0 %v1418_v30 }
  0x74   :  { %683 = vmatprep.subr.bf16.mxu0 %v1419_v31  ;;  %v1481_v31 = vld [vmem:[#allocation10 + $0x70] sm:$0xff]  }
  0x75   :  { %719 = vmatpush1.bf16.msra.mxu1 %v1415_v29 }
  0x76   :  { %720 = vmatprep.subr.bf16.mxu1 %v1423_v32 }
  0x77   :  { %684 = vmatpush1.bf16.msra.mxu0 %v1424_v33 }
  0x78   :  { %685 = vmatprep.subr.bf16.mxu0 %v1425_v35  ;;  %v1482_v35 = vld [vmem:[#allocation10 + $0x30] sm:$0xff]  }
  0x79   :  { %721 = vmatpush1.bf16.msra.mxu1 %v1421_v34 }
  0x7a   :  { %722 = vmatprep.subr.bf16.mxu1 %v1429_v36 }
  0x7b   :  { %686 = vmatpush2.bf16.msra.mxu0 %v1430_v38  ;;  %v1483_v38 = vld [vmem:[#allocation10 + $0x68] sm:$0xff]  }
  0x7c   :  { %687 = vmatprep.subr.bf16.mxu0 %v1431_v39 }
  0x7d   :  { %723 = vmatpush1.bf16.msra.mxu1 %v1427_v37 }
  0x7e   :  { %724 = vmatprep.subr.bf16.mxu1 %v1435_v40 }
  0x7f   :  { %688 = vmatpush2.bf16.msra.mxu0 %v1436_v42  ;;  %v1484_v42 = vld [vmem:[#allocation10 + $0x28] sm:$0xff]  }
  0x80   :  { %689 = vmatprep.subr.bf16.mxu0 %v1437_v43 }
  0x81   :  { %725 = vmatpush1.bf16.msra.mxu1 %v1433_v41 }
  0x82   :  { %726 = vmatprep.subr.bf16.mxu1 %v1441_v44  ;;  %v1485_v44 = vld [vmem:[#allocation10 + $0x60] sm:$0xff]  }
  0x83   :  { %690 = vmatpush2.bf16.msra.mxu0 %v1442_v45  ;;  %v1486_v45 = vld [vmem:[#allocation10 + $0x20] sm:$0xff]  }
  0x84   :  { %691 = vmatprep.subr.bf16.mxu0 %v1443_v47  ;;  %v1488_v47 = vld [vmem:[#allocation10 + $0x18] sm:$0xff]  }
  0x85   :  { %727 = vmatpush2.bf16.msra.mxu1 %v1439_v46  ;;  %v1487_v46 = vld [vmem:[#allocation10 + $0x58] sm:$0xff]  }
  0x86   :  { %728 = vmatprep.subr.bf16.mxu1 %v1447_v48  ;;  %v1489_v48 = vld [vmem:[#allocation10 + $0x50] sm:$0xff]  }
  0x87   :  { %692 = vmatpush2.bf16.msra.mxu0 %v1448_v49  ;;  %v1490_v49 = vld [vmem:[#allocation10 + $0x10] sm:$0xff]  }
  0x88   :  { %693 = vmatprep.subr.bf16.mxu0 %v1449_v51  ;;  %v1492_v51 = vld [vmem:[#allocation10 + $0x8] sm:$0xff]  }
  0x89   :  { %729 = vmatpush2.bf16.msra.mxu1 %v1445_v50  ;;  %v1491_v50 = vld [vmem:[#allocation10 + $0x48] sm:$0xff]  }
  0x8a   :  { %730 = vmatprep.subr.bf16.mxu1 %v1453_v52  ;;  %v1493_v52 = vld [vmem:[#allocation10 + $0x40] sm:$0xff]  }
  0x8b   :  { %694 = vmatpush2.bf16.msra.mxu0 %v1454_v53  ;;  %v1494_v53 = vld [vmem:[#allocation10] sm:$0xff]  }
  0x8c   :  { %695 = vmatprep.subr.bf16.mxu0 %v1455_v55  ;;  %v1695_v55 = vmov 0.0  }
  0x8d   :  { %731 = vmatpush2.bf16.msra.mxu1 %v1451_v54  ;;  %v1495_v54 = vld [vmem:[#allocation11 + $0x38] sm:$0xff]  }
  0x8e   :  { %732 = vmatprep.subr.bf16.mxu1 %v1459_v56  ;;  %v1496_v56 = vld [vmem:[#allocation11 + $0x30] sm:$0xff]  }
  0x8f   :  { %696 = vmatpush2.bf16.msra.mxu0 %v1460_v57  ;;  %v1497_v57 = vld [vmem:[#allocation11 + $0x28] sm:$0xff]  }
  0x90   :  { %697 = vmatprep.subr.bf16.mxu0 %v1461_v59  ;;  %v1499_v59 = vld [vmem:[#allocation11 + $0x18] sm:$0xff]  }
  0x91   :  { %733 = vmatpush2.bf16.msra.mxu1 %v1457_v58  ;;  %v1498_v58 = vld [vmem:[#allocation11 + $0x20] sm:$0xff]  }
  0x92   :  { %734 = vmatprep.subr.bf16.mxu1 %v1465_v60  ;;  %v337_v60 = vld [vmem:[%s1841_s4] sm:$0x3] }
  0x93   :  { %698 = vmatpush2.bf16.msra.mxu0 %v1466_v62 }
  0x94   :  { %699 = vmatprep.subr.bf16.mxu0 %v1467_v63  ;;  %v342_v63 = vrot.slane %v337_v60, %v141_v10  ;;  %v1500_v10 = vld [vmem:[#allocation11 + $0x10] sm:$0xff]  }
  0x95   :  { %735 = vmatpush2.bf16.msra.mxu1 %v1463_v61 }
  0x96   :  { %736 = vmatprep.subr.bf16.mxu1 %v1471_v0 }
  0x97   :  { %700 = vmatpush2.bf16.msra.mxu0 %v1472_v2 }
  0x98   :  { %1280 = vmatprep.subr.bf16.mxu0 %v1479_v7 }
  0x99   :  { %737 = vmatpush2.bf16.msra.mxu1 %v1469_v1  ;;  %v346_v1 = vrot.slane %v337_v60, %v145_v12  ;;  %v1502_v12 = vld [vmem:[#allocation11] sm:$0xff]  }
  0x9a   :  { %738 = vmatprep.subr.bf16.mxu1 %v1475_v3 }
  0x9d   :  { %739 = vmatpush2.bf16.msra.mxu1 %v1473_v4 }
  0x9e   :  { %740 = vmatprep.subr.bf16.mxu1 %v1478_v5 }
  0xa1   :  { %741 = vmatpush2.bf16.msra.mxu1 %v1476_v6 }
  0xa2   :  { %1320 = vmatprep.subr.bf16.mxu1 %v1695_v55 }
 0x11c   :  { %v217_v15 = vpop.f32.mrf.mxu1 }
 0x11d   :  { %v218_v16 = vadd.f32 %v217_v15, %v142_v13 }
 0x11e   :  { %v219_v18 = vpop.f32.mrf.mxu1 }
 0x11f   :  { %v220_v19 = vadd.f32 %v219_v18, %v146_v14  ;;  %v265_v21 = vmax.f32 %v218_v16, 0.0  ;;  %v1503_v18 = vld [vmem:[#allocation13 + $0x38] sm:$0xff]  }
 0x120   :  { %v221_v22 = vpop.f32.mrf.mxu1 }
 0x121   :  { %v266_v24 = vmax.f32 %v220_v19, 0.0  ;;  %v269_v29 = vpack.c.bf16 %v265_v21, %v265_v21  ;;  %v1504_v19 = vld [vmem:[#allocation13 + $0x30] sm:$0xff]   ;;  %v1506_v21 = vld [vmem:[#allocation13 + $0x20] sm:$0xff]   ;;  %v1507_v22 = vld [vmem:[#allocation13 + $0x18] sm:$0xff]  }
 0x122   :  { %v222_v25 = vpop.f32.mrf.mxu1 }
 0x123   :  { %v270_v26 = vpack.c.bf16 %v266_v24, %v266_v24  ;;  %v1245_v25 = vld [vmem:[%s1843_s6] ss:$0 sm:$0xff] }
 0x124   :  { %v258_v30 = vpop.f32.mrf.mxu1 }
 0x125   :  { %v259_v32 = vadd.f32 %v258_v30, %v150_v23  ;;  %701 = vmatprep.mubr.bf16.mxu0 %v270_v26  ;;  %v1508_v23 = vld [vmem:[#allocation13 + $0x10] sm:$0xff]  }
 0x126   :  { %v260_v33 = vpop.f32.mrf.mxu1  ;;  %702 = vmatmul.mubr.bf16.vlgmr.msra.gmra.mxu0 %v269_v29 }
 0x127   :  { %v261_v34 = vadd.f32 %v260_v33, %v154_v27  ;;  %1281 = vmatpush3.bf16.msra.mxu0 %v1480_v28  ;;  %v267_v36 = vmax.f32 %v259_v32, 0.0  ;;  %v1509_v33 = vld [vmem:[#allocation13 + $0x8] sm:$0xff]  }
 0x128   :  { %v262_v37 = vpop.f32.mrf.mxu1  ;;  %1282 = vmatprep.subr.bf16.mxu0 %v1481_v31 }
 0x129   :  { %v268_v39 = vmax.f32 %v261_v34, 0.0  ;;  %v271_v43 = vpack.c.bf16 %v267_v36, %v267_v36  ;;  %v1510_v34 = vld [vmem:[#allocation13] sm:$0xff]  }
 0x12a   :  { %v263_v40 = vpop.f32.mrf.mxu1 }
 0x12b   :  { %v272_v41 = vpack.c.bf16 %v268_v39, %v268_v39  ;;  %1283 = vmatpush3.bf16.msra.mxu0 %v1482_v35  ;;  %v1262_v35 = vld [vmem:[%s1845_s8] ss:$0 sm:$0xff]  ;;  %s1651_s8 = scalar_lea.vmem %s1164_s3, 128 }
 0x12c   :  { %1284 = vmatprep.subr.bf16.mxu0 %v1483_v38  ;;  %p1652_p7 = scmp.ne.s32.totalorder %s1164_s3, %s1651_s8  ;;  %p1657_p9 = scmp.lt.s32.totalorder %s1651_s8, %s1651_s8 }
 0x12d   :  { %742 = vmatprep.mubr.bf16.mxu1 %v272_v41 }
 0x12e   :  { %743 = vmatmul.mubr.bf16.vlgmr.msra.gmra.mxu1 %v271_v43  ;;  %v1271_v43 = vld [vmem:[%s1847_s10] ss:$0 sm:$0xff]  ;;  %p1658_p10 = por %p1657_p9, %p1656_p8 }
 0x12f   :  { %1285 = vmatpush3.bf16.msra.mxu0 %v1484_v42  ;;  %1321 = vmatpush3.bf16.msra.mxu1 %v1495_v54 }
 0x130   :  { %1286 = vmatprep.subr.bf16.mxu0 %v1485_v44  ;;  %1322 = vmatprep.subr.bf16.mxu1 %v1695_v55  ;;  %p1659_p11 = pnand %p1658_p10, %p1652_p7 }
 0x131   :  { %1336 = vmatprep.mubr.msk.bf16.mxu1 %vm1696_vm1, %v1695_v55 }
 0x133   :  { %1287 = vmatpush3.bf16.msra.mxu0 %v1486_v45  ;;  %1323 = vmatpush3.bf16.msra.mxu1 %v1496_v56 }
 0x134   :  { %1288 = vmatprep.subr.bf16.mxu0 %v1487_v46  ;;  %1324 = vmatprep.subr.bf16.mxu1 %v1695_v55 }
 0x137   :  { %1289 = vmatpush3.bf16.msra.mxu0 %v1488_v47  ;;  %1325 = vmatpush3.bf16.msra.mxu1 %v1497_v57 }
 0x138   :  { %1290 = vmatprep.subr.bf16.mxu0 %v1489_v48  ;;  %1326 = vmatprep.subr.bf16.mxu1 %v1695_v55 }
 0x13b   :  { %1291 = vmatpush3.bf16.msra.mxu0 %v1490_v49  ;;  %1327 = vmatpush3.bf16.msra.mxu1 %v1498_v58 }
 0x13c   :  { %1292 = vmatprep.subr.bf16.mxu0 %v1491_v50  ;;  %1328 = vmatprep.subr.bf16.mxu1 %v1695_v55 }
 0x13f   :  { %1293 = vmatpush3.bf16.msra.mxu0 %v1492_v51  ;;  %1329 = vmatpush3.bf16.msra.mxu1 %v1499_v59 }
 0x140   :  { %1294 = vmatprep.subr.bf16.mxu0 %v1493_v52  ;;  %1330 = vmatprep.subr.bf16.mxu1 %v1695_v55 }
 0x143   :  { %1295 = vmatpush3.bf16.msra.mxu0 %v1494_v53  ;;  %1331 = vmatpush3.bf16.msra.mxu1 %v1500_v10 }
 0x144   :  { %1340 = vmatprep.subr.bf16.mxu0 %v1695_v55  ;;  %1332 = vmatprep.subr.bf16.mxu1 %v1695_v55 }
 0x147   :  { %1333 = vmatpush3.bf16.msra.mxu1 %v1501_v9 }
 0x148   :  { %1334 = vmatprep.subr.bf16.mxu1 %v1695_v55 }
 0x14b   :  { %1335 = vmatpush3.bf16.msra.mxu1 %v1502_v12 }
 0x1e6   :  { %v703_v61 = vpop.f32.mrf.mxu0 }
 0x1e7   :  { %v704_v3 = vadd.f32 %v703_v61, %v342_v63 }
 0x1e8   :  { %v705_v62 = vpop.f32.mrf.mxu0 }
 0x1e9   :  { %v706_v5 = vadd.f32 %v705_v62, %v346_v1 }
 0x1ea   :  { %v707_v0 = vpop.f32.mrf.mxu0 }
 0x1ec   :  { %v708_v2 = vpop.f32.mrf.mxu0 }
 0x1ee   :  { %v744_v4 = vpop.f32.mrf.mxu1 }
 0x1ef   :  { %v745_v6 = vadd.f32 %v744_v4, %v704_v3 }
 0x1f0   :  { %v746_v7 = vpop.f32.mrf.mxu1 }
 0x1f1   :  { %v747_v8 = vadd.f32 %v746_v7, %v706_v5  ;;  %v751_v11 = vmax.f32 %v745_v6, 0.0 }
 0x1f2   :  { %v748_v13 = vpop.f32.mrf.mxu1 }
 0x1f3   :  { %v752_v14 = vmax.f32 %v747_v8, 0.0  ;;  %v753_v17 = vpack.c.bf16 %v751_v11, %v751_v11 }
 0x1f4   :  { %v749_v15 = vpop.f32.mrf.mxu1 }
 0x1f5   :  { %v754_v16 = vpack.c.bf16 %v752_v14, %v752_v14 }
 0x1f7   :  { %922 = vmatprep.mubr.bf16.mxu0 %v754_v16 }
 0x1f8   :  { %923 = vmatmul.mubr.bf16.vlgmr.msra.gmra.mxu0 %v753_v17 }
 0x1f9   :  { %1356 = vmatprep.mubr.msk.bf16.mxu0 %vm1696_vm1, %v1695_v55  ;;  %1341 = vmatpush3.bf16.msra.mxu0 %v1503_v18 }
 0x1fa   :  { %1342 = vmatprep.subr.bf16.mxu0 %v1695_v55 }
 0x1fd   :  { %1343 = vmatpush3.bf16.msra.mxu0 %v1504_v19 }
 0x1fe   :  { %1344 = vmatprep.subr.bf16.mxu0 %v1695_v55 }
 0x201   :  { %1345 = vmatpush3.bf16.msra.mxu0 %v1505_v20 }
 0x202   :  { %1346 = vmatprep.subr.bf16.mxu0 %v1695_v55 }
 0x205   :  { %1347 = vmatpush3.bf16.msra.mxu0 %v1506_v21 }
 0x206   :  { %1348 = vmatprep.subr.bf16.mxu0 %v1695_v55 }
 0x209   :  { %1349 = vmatpush3.bf16.msra.mxu0 %v1507_v22 }
 0x20a   :  { %1350 = vmatprep.subr.bf16.mxu0 %v1695_v55 }
 0x20d   :  { %1351 = vmatpush3.bf16.msra.mxu0 %v1508_v23 }
 0x20e   :  { %1352 = vmatprep.subr.bf16.mxu0 %v1695_v55 }
 0x211   :  { %1353 = vmatpush3.bf16.msra.mxu0 %v1509_v33 }
 0x212   :  { %1354 = vmatprep.subr.bf16.mxu0 %v1695_v55 }
 0x215   :  { %1355 = vmatpush3.bf16.msra.mxu0 %v1510_v34 }
 0x2b8   :  { %v1296_v24 = vpop.f32.mrf.mxu0 }
 0x2ba   :  { %v1297_v26 = vpop.f32.mrf.mxu0 }
 0x2bb   :  { %v1298_v27 = vadd.f32 %v1297_v26, %v1296_v24 }
 0x2bc   :  { %v1299_v28 = vpop.f32.mrf.mxu0 }
 0x2bd   :  { %v925_v29 = vadd.f32 %v1298_v27, %v1245_v25 }
 0x2be   :  { %v1300_v30 = vpop.f32.mrf.mxu0 }
 0x2bf   :  { %v930_v31 = vmax.f32 %v925_v29, 0.0 }
 0x2c1   :  { %v931_v32 = vpack.c.bf16 %v930_v31, %v930_v31 }
 0x2c3   :  { %1337 = vmatmul.mubr.bf16.vlgmr.msra.gmra.mxu1 %v931_v32 }
 0x383   :  { %v1037_v36 = vpop.f32.mrf.mxu1 }
 0x384   :  { %v1038_v37 = vadd.f32 %v1262_v35, %v1037_v36 }
 0x385   :  { %v1338_v38 = vpop.f32.mrf.mxu1 }
 0x386   :  { %v1043_v39 = vmax.f32 %v1038_v37, 0.0 }
 0x387   :  { %v1040_v40 = vpop.f32.mrf.mxu1 }
 0x388   :  { %v1044_v41 = vpack.c.bf16 %v1043_v39, %v1043_v39 }
 0x389   :  { %v1339_v42 = vpop.f32.mrf.mxu1 }
 0x38a   :  { %1357 = vmatmul.mubr.bf16.vlgmr.msra.gmra.mxu0 %v1044_v41 }
 0x44a   :  { %v1150_v44 = vpop.f32.mrf.mxu0 }
 0x44b   :  { %v1151_v45 = vadd.f32 %v1271_v43, %v1150_v44 }
 0x44c   :  { %v1358_v46 = vpop.f32.mrf.mxu0 }
 0x44d   :  { %1156 = vst [vmem:[#allocation14] sm:$0xff] %v1151_v45 }
 0x44e   :  { %v1153_v47 = vpop.f32.mrf.mxu0 }
 0x44f   :  { %1662 = shalt.err (!%p1659_p11)
}
 0x450   :  { %1166 = dma.vmem_to_hbm [thread:$0]  %s1164_s3, 128, %s1848_s11, [#allocation4]   ;;  %v1359_v48 = vpop.f32.mrf.mxu0 }
 0x451   :  { %1679 = dma.done.wait [#allocation4], 128  }
 0x452   :  { %1680 = vsyncadd [#allocation4], 4294967168 }
 0x453   :  { %1170 = vsyncpa [#allocation3], 1 }
 0x454   :  { %1171 = vsyncpa [#allocation6], 1 }
 0x455   :  { %1172 = vsyncpa [#allocation9], 1 }
 0x456   :  { %1173 = vsyncpa [#allocation12], 1 }
 0x457   :  { %1174 = vsyncpa [#allocation4], 1 }

</bundles_post_ra>
